<compile_context>
chip_gen: v7x
topology: tpu7x:2x2x1
jax: 0.10.0
libtpu: 0.0.40
codegen_flags: <defaults>
</compile_context>

<pallas_src>
import functools

import jax
import jax.numpy as jnp
from jax import lax
from jax.experimental import pallas as pl
from jax.experimental.pallas import tpu as pltpu


def _round_up(x, m):
    return (x + m - 1) // m * m


def _infonce_kernel(q_ref, r_ref, lbl_ref, out_ref,
                    qn_scr, m_scr, l_scr, lab_scr,
                    *, tau, n_valid, n_padded, b_valid, static_shift):
    n = pl.program_id(1)
    num_n = pl.num_programs(1)
    tb = q_ref.shape[0]
    tn = r_ref.shape[0]
    # Hoisted: program_id must not be bound inside a pl.when body.
    b_base = pl.program_id(0) * tb

    # ---- init (first N step of this B tile): normalize + 1/tau-scale the
    # resident query tile into VMEM scratch, reset the softmax state.
    @pl.when(n == 0)
    def _():
        q = q_ref[...].astype(jnp.float32)                      # (TB, Dp)
        # F.normalize eps=1e-12:  max(||x||, eps) == sqrt(max(||x||^2, eps^2))
        inv = lax.rsqrt(jnp.maximum(jnp.sum(q * q, axis=-1, keepdims=True),
                                    1e-24))
        qn_scr[...] = (q * (inv * (1.0 / tau))).astype(qn_scr.dtype)
        if not static_shift:
            m_scr[...] = jnp.full_like(m_scr, -jnp.inf)
        l_scr[...] = jnp.zeros_like(l_scr)
        lab_scr[...] = jnp.zeros_like(lab_scr)

    # ---- MXU: ref tile arrives pre-normalized (wrapper) in the matmul dtype;
    # contract on the last (lane) dim of BOTH operands (no transpose), f32 acc.
    logits = lax.dot_general(
        qn_scr[...], r_ref[...],
        dimension_numbers=(((1,), (1,)), ((), ())),
        preferred_element_type=jnp.float32)                     # (TB, TN)

    col = lax.broadcasted_iota(jnp.int32, (1, tn), 1)           # tile-local
    lbl_local = lbl_ref[...] - n * tn                           # (TB, 1)

    def update(lg):
        # label logit: each label hits exactly one N tile / one column.
        hit = col == lbl_local                                   # (TB, TN)
        lab_scr[...] += jnp.sum(jnp.where(hit, lg, 0.0),
                                axis=-1, keepdims=True)
        if static_shift:
            # |logit| <= 1/tau after L2 normalization -> fixed shift, no max.
            l_scr[...] += jnp.sum(jnp.exp(lg - (1.0 / tau)),
                                  axis=-1, keepdims=True)
        else:
            m_new = jnp.maximum(m_scr[...], jnp.max(lg, axis=-1, keepdims=True))
            alpha = jnp.exp(m_scr[...] - m_new)
            p = jnp.exp(lg - m_new)
            l_scr[...] = alpha * l_scr[...] + jnp.sum(p, axis=-1, keepdims=True)
            m_scr[...] = m_new

    if n_valid == n_padded:
        # No N padding anywhere: never pay mask VPU ops.
        update(logits)
    else:
        # Only the ragged tile pays the compare/select mask.
        needs_mask = (n + 1) * tn > n_valid

        @pl.when(needs_mask)
        def _():
            update(jnp.where(col < (n_valid - n * tn), logits, -jnp.inf))

        @pl.when(jnp.logical_not(needs_mask))
        def _():
            update(logits)

    # ---- finalize: NLL = shift + log(l) - label_logit; lane-dense write.
    @pl.when(n == num_n - 1)
    def _():
        shift = (1.0 / tau) if static_shift else m_scr[...]
        nll = shift + jnp.log(l_scr[...]) - lab_scr[...]        # (TB, 1)
        row = lax.broadcasted_iota(jnp.int32, nll.shape, 0) + b_base
        nll = jnp.where(row < b_valid, nll, 0.0)                # drop padded B
        partial = jnp.sum(nll)                                  # scalar
        rr = lax.broadcasted_iota(jnp.int32, (8, 128), 0)
        cc = lax.broadcasted_iota(jnp.int32, (8, 128), 1)
        out_ref[...] = jnp.where((rr == 0) & (cc == 0), partial, 0.0)


def infonce_loss(query_feat, ref_feats, labels, tau=0.1, *,
                 block_b=None, block_n=1024,
                 matmul_dtype=jnp.bfloat16, static_shift=None,
                 ref_buffers=None, vmem_limit_bytes=None):
    """InfoNCE loss matching the PyTorch module's forward.

    query_feat: (B, D) float, ref_feats: (N, D) float, labels: (B,) int.
    block_b=None: keep the whole batch resident when it fits (ref streamed
    from HBM exactly once), else tile B at 256.  block_n: sweep 1024-2048.
    ref_buffers: e.g. 3 on v5e to deepen the ref-stream pipeline.
    """
    B, D = query_feat.shape
    N, Dr = ref_feats.shape
    assert D == Dr
    if static_shift is None:
        static_shift = float(tau) >= 0.02    # online-max fallback for tiny tau

    Dp = _round_up(D, 128)
    b_full = _round_up(B, 8)
    if block_b is None:
        block_b = b_full if b_full <= 512 else 256
    TB = _round_up(min(block_b, b_full), 8)
    Bp = _round_up(B, TB)
    TN = _round_up(min(block_n, _round_up(N, 128)), 128)
    Np = _round_up(N, TN)
    num_b, num_n = Bp // TB, Np // TN

    # --- wrapper-side prep -------------------------------------------------
    # Pre-normalize ref_feats ONCE (fused with the padding copy) and cast to
    # the matmul dtype, so the streamed bytes are halved and the kernel does
    # no per-tile normalization of the large operand.
    r32 = ref_feats.astype(jnp.float32)
    r_inv = lax.rsqrt(jnp.maximum(jnp.sum(r32 * r32, axis=1, keepdims=True),
                                  1e-24))
    rn = (r32 * r_inv).astype(matmul_dtype)
    if (Np, Dp) != (N, D):
        rp = jnp.zeros((Np, Dp), matmul_dtype).at[:N, :D].set(rn)
    else:
        rp = rn

    # Query is normalized in-kernel (once per B tile); just pad it.
    if (Bp, Dp) != (B, D):
        qp = jnp.zeros((Bp, Dp), query_feat.dtype).at[:B, :D].set(query_feat)
    else:
        qp = query_feat
    lbl = jnp.zeros((Bp, 1), jnp.int32).at[:B, 0].set(labels.astype(jnp.int32))

    # --- VMEM budget: 2x estimate, capped below v7x physical (64 MiB). ------
    q_bytes = jnp.dtype(qp.dtype).itemsize
    mm_bytes = jnp.dtype(matmul_dtype).itemsize
    nbuf_r = ref_buffers if ref_buffers is not None else 2
    est = (2 * TB * Dp * q_bytes          # query tile (double-buffered)
           + nbuf_r * TN * Dp * mm_bytes  # streamed ref tile
           + 2 * TB * 128 * 4             # labels (lane-padded)
           + 2 * 8 * 128 * 4              # output tile
           + TB * Dp * mm_bytes           # qn scratch
           + 3 * TB * 128 * 4             # m / l / lab scratch (lane-padded)
           + 4 * TB * TN * 4)             # logits / exp intermediates
    if vmem_limit_bytes is None:
        vmem_limit_bytes = min(48 * 1024 * 1024,
                               max(16 * 1024 * 1024, 2 * est))

    if ref_buffers is None:
        r_spec = pl.BlockSpec((TN, Dp), lambda b, n: (n, 0))
    else:
        r_spec = pl.BlockSpec((TN, Dp), lambda b, n: (n, 0),
                              pipeline_mode=pl.Buffered(ref_buffers))

    kernel = functools.partial(_infonce_kernel, tau=float(tau),
                               n_valid=N, n_padded=Np, b_valid=B,
                               static_shift=static_shift)

    out = pl.pallas_call(
        kernel,
        out_shape=jax.ShapeDtypeStruct((num_b * 8, 128), jnp.float32),
        grid_spec=pltpu.PrefetchScalarGridSpec(
            num_scalar_prefetch=0,
            grid=(num_b, num_n),
            in_specs=[
                # query tile: resident across the N reduction axis
                pl.BlockSpec((TB, Dp), lambda b, n: (b, 0)),
                # pre-normalized ref tile: streamed over N
                r_spec,
                # labels: tiny int32 column, resident across N
                pl.BlockSpec((TB, 1), lambda b, n: (b, 0)),
            ],
            out_specs=pl.BlockSpec((8, 128), lambda b, n: (b, 0)),
            scratch_shapes=[
                pltpu.VMEM((TB, Dp), matmul_dtype),   # normalized/scaled q
                pltpu.VMEM((TB, 1), jnp.float32),     # running max m
                pltpu.VMEM((TB, 1), jnp.float32),     # running sum-exp l
                pltpu.VMEM((TB, 1), jnp.float32),     # label logit
            ]),
        compiler_params=pltpu.CompilerParams(
            dimension_semantics=("parallel", "arbitrary"),
            vmem_limit_bytes=vmem_limit_bytes),
    )(qp, rp, lbl)

    # Exactly one nonzero partial per B tile; everything else is exactly 0.
    return jnp.sum(out) / jnp.float32(B)


def infonce_loss_ref(query_feat, ref_feats, labels, tau=0.1):
    """Pure-JAX reference matching the PyTorch module."""
    q = query_feat / jnp.maximum(
        jnp.linalg.norm(query_feat, axis=1, keepdims=True), 1e-12)
    r = ref_feats / jnp.maximum(
        jnp.linalg.norm(ref_feats, axis=1, keepdims=True), 1e-12)
    logits = (q @ r.T) / tau
    logp = jax.nn.log_softmax(logits, axis=-1)
    nll = -jnp.take_along_axis(logp, labels[:, None].astype(jnp.int32), axis=1)
    return jnp.mean(nll)


if __name__ == "__main__":
    # Small shapes: B=8 queries, N=8 references, D=32 features.
    B, N, D = 8, 8, 32
    tau = 0.1

    key = jax.random.PRNGKey(0)
    kq, kr = jax.random.split(key)
    query_feat = jax.random.normal(kq, (B, D), dtype=jnp.float32)
    ref_feats = jax.random.normal(kr, (N, D), dtype=jnp.float32)
    labels = jnp.arange(B, dtype=jnp.int32)          # positive pair i <-> i

    ref = infonce_loss_ref(query_feat, ref_feats, labels, tau=tau)

    # f32 MXU path, online-max softmax: tight check against the reference.
    loss_f32 = infonce_loss(query_feat, ref_feats, labels, tau=tau,
                            matmul_dtype=jnp.float32, static_shift=False)
    loss_f32 = jax.block_until_ready(loss_f32)
    assert jnp.allclose(loss_f32, ref, rtol=1e-4, atol=1e-4), (loss_f32, ref)

    # f32 MXU path, static-shift softmax (tau >= 0.02): still tight.
    loss_ss = infonce_loss(query_feat, ref_feats, labels, tau=tau,
                           matmul_dtype=jnp.float32)
    loss_ss = jax.block_until_ready(loss_ss)
    assert jnp.allclose(loss_ss, ref, rtol=1e-4, atol=1e-4), (loss_ss, ref)

    # bf16 MXU path (default, MXU-peak): looser tolerance.
    loss_bf16 = infonce_loss(query_feat, ref_feats, labels, tau=tau)
    loss_bf16 = jax.block_until_ready(loss_bf16)
    assert jnp.allclose(loss_bf16, ref, rtol=0.1, atol=0.1), (loss_bf16, ref)

    print("KERNEL_OK")
</pallas_src>

<mosaic_0001>
module attributes {stable_mosaic.version = 11 : i64} {
  func.func @_infonce_kernel(%arg0: i32, %arg1: i32, %arg2: memref<8x128xf32, #tpu.memory_space<vmem>>, %arg3: memref<128x128xf32, #tpu.memory_space<vmem>>, %arg4: memref<8x1xi32, #tpu.memory_space<vmem>>, %arg5: memref<8x128xf32, #tpu.memory_space<vmem>>, %arg6: memref<8x128xf32, #tpu.memory_space<vmem>>, %arg7: memref<8x1xf32, #tpu.memory_space<vmem>>, %arg8: memref<8x1xf32, #tpu.memory_space<vmem>>, %arg9: memref<8x1xf32, #tpu.memory_space<vmem>>) attributes {dimension_semantics = [#tpu.dimension_semantics<parallel>, #tpu.dimension_semantics<arbitrary>], iteration_bounds = array<i64: 1, 1>, scalar_prefetch = 0 : i64, scratch_operands = 4 : i64, tpu.core_type = #tpu.core_type<tc>, window_params = [{transform_indices = @transform_0, window_bounds = array<i64: 8, 128>}, {transform_indices = @transform_1, window_bounds = array<i64: 128, 128>}, {transform_indices = @transform_2, window_bounds = array<i64: 8, 1>}, {transform_indices = @transform_3, window_bounds = array<i64: 8, 128>}]} {
    %c8_i32 = arith.constant 8 : i32
    %0 = arith.muli %arg0, %c8_i32 : i32
    %c0_i32 = arith.constant 0 : i32
    %1 = arith.cmpi eq, %arg1, %c0_i32 : i32
    %2 = arith.extui %1 : i1 to i32
    %c0_i32_0 = arith.constant 0 : i32
    %3 = arith.cmpi ne, %2, %c0_i32_0 : i32
    scf.if %3 {
      %c0_12 = arith.constant 0 : index
      %c0_13 = arith.constant 0 : index
      %23 = vector.load %arg2[%c0_12, %c0_13] : memref<8x128xf32, #tpu.memory_space<vmem>>, vector<8x128xf32>
      %24 = arith.mulf %23, %23 : vector<8x128xf32>
      %cst_14 = arith.constant dense<0.000000e+00> : vector<8xf32>
      %25 = vector.multi_reduction <add>, %24, %cst_14 [1] : vector<8x128xf32> to vector<8xf32>
      %26 = vector.shape_cast %25 : vector<8xf32> to vector<8x1xf32>
      %cst_15 = arith.constant 1.000000e-24 : f32
      %27 = vector.broadcast %cst_15 : f32 to vector<8x1xf32>
      %28 = arith.maximumf %26, %27 : vector<8x1xf32>
      %29 = math.rsqrt %28 : vector<8x1xf32>
      %cst_16 = arith.constant 1.000000e+01 : f32
      %30 = vector.broadcast %cst_16 : f32 to vector<8x1xf32>
      %31 = arith.mulf %29, %30 : vector<8x1xf32>
      %32 = vector.broadcast %31 : vector<8x1xf32> to vector<8x128xf32>
      %33 = arith.mulf %23, %32 : vector<8x128xf32>
      %c0_17 = arith.constant 0 : index
      %c0_18 = arith.constant 0 : index
      %34 = vector.load %arg6[%c0_17, %c0_18] : memref<8x128xf32, #tpu.memory_space<vmem>>, vector<8x128xf32>
      tpu.vector_store %arg6[%c0_17, %c0_18], %33 {strides = array<i32>} : memref<8x128xf32, #tpu.memory_space<vmem>>, vector<8x128xf32>,
      %cst_19 = arith.constant 0xFF800000 : f32
      %35 = vector.broadcast %cst_19 : f32 to vector<8x1xf32>
      %c0_20 = arith.constant 0 : index
      %c0_21 = arith.constant 0 : index
      %36 = vector.load %arg7[%c0_20, %c0_21] : memref<8x1xf32, #tpu.memory_space<vmem>>, vector<8x1xf32>
      tpu.vector_store %arg7[%c0_20, %c0_21], %35 {strides = array<i32>} : memref<8x1xf32, #tpu.memory_space<vmem>>, vector<8x1xf32>,
      %cst_22 = arith.constant 0.000000e+00 : f32
      %37 = vector.broadcast %cst_22 : f32 to vector<8x1xf32>
      %c0_23 = arith.constant 0 : index
      %c0_24 = arith.constant 0 : index
      %38 = vector.load %arg8[%c0_23, %c0_24] : memref<8x1xf32, #tpu.memory_space<vmem>>, vector<8x1xf32>
      tpu.vector_store %arg8[%c0_23, %c0_24], %37 {strides = array<i32>} : memref<8x1xf32, #tpu.memory_space<vmem>>, vector<8x1xf32>,
      %cst_25 = arith.constant 0.000000e+00 : f32
      %39 = vector.broadcast %cst_25 : f32 to vector<8x1xf32>
      %c0_26 = arith.constant 0 : index
      %c0_27 = arith.constant 0 : index
      %40 = vector.load %arg9[%c0_26, %c0_27] : memref<8x1xf32, #tpu.memory_space<vmem>>, vector<8x1xf32>
      tpu.vector_store %arg9[%c0_26, %c0_27], %39 {strides = array<i32>} : memref<8x1xf32, #tpu.memory_space<vmem>>, vector<8x1xf32>,
    } else {
    }
    %c0 = arith.constant 0 : index
    %c0_1 = arith.constant 0 : index
    %4 = vector.load %arg6[%c0, %c0_1] : memref<8x128xf32, #tpu.memory_space<vmem>>, vector<8x128xf32>
    %c0_2 = arith.constant 0 : index
    %c0_3 = arith.constant 0 : index
    %5 = vector.load %arg3[%c0_2, %c0_3] : memref<128x128xf32, #tpu.memory_space<vmem>>, vector<128x128xf32>
    %cst = arith.constant dense<0.000000e+00> : vector<8x128xf32>
    %6 = tpu.matmul %4, %5, %cst {dimension_numbers = #tpu.dot_dimension_numbers<[1], [1], [0], [0], [0, 0, 1, 0], [], []>} : vector<8x128xf32>, vector<128x128xf32>, vector<8x128xf32> -> vector<8x128xf32>
    %7 = tpu.iota {dimensions = array<i32: 1>} : vector<1x128xi32>
    %c0_4 = arith.constant 0 : index
    %c0_5 = arith.constant 0 : index
    %8 = vector.load %arg4[%c0_4, %c0_5] : memref<8x1xi32, #tpu.memory_space<vmem>>, vector<8x1xi32>
    %c128_i32 = arith.constant 128 : i32
    %9 = arith.muli %arg1, %c128_i32 : i32
    %10 = vector.broadcast %9 : i32 to vector<8x1xi32>
    %11 = arith.subi %8, %10 : vector<8x1xi32>
    %c1_i32 = arith.constant 1 : i32
    %12 = arith.addi %arg1, %c1_i32 : i32
    %c128_i32_6 = arith.constant 128 : i32
    %13 = arith.muli %12, %c128_i32_6 : i32
    %c8_i32_7 = arith.constant 8 : i32
    %14 = arith.cmpi sgt, %13, %c8_i32_7 : i32
    %15 = arith.extui %14 : i1 to i32
    %c0_i32_8 = arith.constant 0 : i32
    %16 = arith.cmpi ne, %15, %c0_i32_8 : i32
    scf.if %16 {
      %c128_i32_12 = arith.constant 128 : i32
      %23 = arith.muli %arg1, %c128_i32_12 : i32
      %c8_i32_13 = arith.constant 8 : i32
      %24 = arith.subi %c8_i32_13, %23 : i32
      %25 = vector.broadcast %24 : i32 to vector<1x128xi32>
      %26 = arith.cmpi slt, %7, %25 : vector<1x128xi32>
      %cst_14 = arith.constant 0xFF800000 : f32
      %27 = vector.shape_cast %26 : vector<1x128xi1> to vector<1x128xi1>
      %28 = vector.broadcast %27 : vector<1x128xi1> to vector<8x128xi1>
      %29 = vector.broadcast %cst_14 : f32 to vector<8x128xf32>
      %30 = arith.select %28, %6, %29 : vector<8x128xi1>, vector<8x128xf32>
      %31 = vector.broadcast %7 : vector<1x128xi32> to vector<8x128xi32>
      %32 = vector.broadcast %11 : vector<8x1xi32> to vector<8x128xi32>
      %33 = arith.cmpi eq, %31, %32 : vector<8x128xi32>
      %c0_15 = arith.constant 0 : index
      %c0_16 = arith.constant 0 : index
      %34 = vector.load %arg9[%c0_15, %c0_16] : memref<8x1xf32, #tpu.memory_space<vmem>>, vector<8x1xf32>
      %cst_17 = arith.constant 0.000000e+00 : f32
      %35 = vector.broadcast %cst_17 : f32 to vector<8x128xf32>
      %36 = arith.select %33, %30, %35 : vector<8x128xi1>, vector<8x128xf32>
      %cst_18 = arith.constant dense<0.000000e+00> : vector<8xf32>
      %37 = vector.multi_reduction <add>, %36, %cst_18 [1] : vector<8x128xf32> to vector<8xf32>
      %38 = vector.shape_cast %37 : vector<8xf32> to vector<8x1xf32>
      %39 = arith.addf %34, %38 : vector<8x1xf32>
      %c0_19 = arith.constant 0 : index
      %c0_20 = arith.constant 0 : index
      %40 = vector.load %arg9[%c0_19, %c0_20] : memref<8x1xf32, #tpu.memory_space<vmem>>, vector<8x1xf32>
      tpu.vector_store %arg9[%c0_19, %c0_20], %39 {strides = array<i32>} : memref<8x1xf32, #tpu.memory_space<vmem>>, vector<8x1xf32>,
      %c0_21 = arith.constant 0 : index
      %c0_22 = arith.constant 0 : index
      %41 = vector.load %arg7[%c0_21, %c0_22] : memref<8x1xf32, #tpu.memory_space<vmem>>, vector<8x1xf32>
      %cst_23 = arith.constant dense<0xFF800000> : vector<8xf32>
      %42 = vector.multi_reduction <maximumf>, %30, %cst_23 [1] : vector<8x128xf32> to vector<8xf32>
      %43 = vector.shape_cast %42 : vector<8xf32> to vector<8x1xf32>
      %44 = arith.maximumf %41, %43 : vector<8x1xf32>
      %c0_24 = arith.constant 0 : index
      %c0_25 = arith.constant 0 : index
      %45 = vector.load %arg7[%c0_24, %c0_25] : memref<8x1xf32, #tpu.memory_space<vmem>>, vector<8x1xf32>
      %46 = arith.subf %45, %44 : vector<8x1xf32>
      %47 = math.exp %46 : vector<8x1xf32>
      %48 = vector.broadcast %44 : vector<8x1xf32> to vector<8x128xf32>
      %49 = arith.subf %30, %48 : vector<8x128xf32>
      %50 = math.exp %49 : vector<8x128xf32>
      %c0_26 = arith.constant 0 : index
      %c0_27 = arith.constant 0 : index
      %51 = vector.load %arg8[%c0_26, %c0_27] : memref<8x1xf32, #tpu.memory_space<vmem>>, vector<8x1xf32>
      %52 = arith.mulf %47, %51 : vector<8x1xf32>
      %cst_28 = arith.constant dense<0.000000e+00> : vector<8xf32>
      %53 = vector.multi_reduction <add>, %50, %cst_28 [1] : vector<8x128xf32> to vector<8xf32>
      %54 = vector.shape_cast %53 : vector<8xf32> to vector<8x1xf32>
      %55 = arith.addf %52, %54 : vector<8x1xf32>
      %c0_29 = arith.constant 0 : index
      %c0_30 = arith.constant 0 : index
      %56 = vector.load %arg8[%c0_29, %c0_30] : memref<8x1xf32, #tpu.memory_space<vmem>>, vector<8x1xf32>
      tpu.vector_store %arg8[%c0_29, %c0_30], %55 {strides = array<i32>} : memref<8x1xf32, #tpu.memory_space<vmem>>, vector<8x1xf32>,
      %c0_31 = arith.constant 0 : index
      %c0_32 = arith.constant 0 : index
      %57 = vector.load %arg7[%c0_31, %c0_32] : memref<8x1xf32, #tpu.memory_space<vmem>>, vector<8x1xf32>
      tpu.vector_store %arg7[%c0_31, %c0_32], %44 {strides = array<i32>} : memref<8x1xf32, #tpu.memory_space<vmem>>, vector<8x1xf32>,
    } else {
    }
    %true = arith.constant true
    %17 = arith.xori %14, %true : i1
    %18 = arith.extui %17 : i1 to i32
    %c0_i32_9 = arith.constant 0 : i32
    %19 = arith.cmpi ne, %18, %c0_i32_9 : i32
    scf.if %19 {
      %23 = vector.broadcast %7 : vector<1x128xi32> to vector<8x128xi32>
      %24 = vector.broadcast %11 : vector<8x1xi32> to vector<8x128xi32>
      %25 = arith.cmpi eq, %23, %24 : vector<8x128xi32>
      %c0_12 = arith.constant 0 : index
      %c0_13 = arith.constant 0 : index
      %26 = vector.load %arg9[%c0_12, %c0_13] : memref<8x1xf32, #tpu.memory_space<vmem>>, vector<8x1xf32>
      %cst_14 = arith.constant 0.000000e+00 : f32
      %27 = vector.broadcast %cst_14 : f32 to vector<8x128xf32>
      %28 = arith.select %25, %6, %27 : vector<8x128xi1>, vector<8x128xf32>
      %cst_15 = arith.constant dense<0.000000e+00> : vector<8xf32>
      %29 = vector.multi_reduction <add>, %28, %cst_15 [1] : vector<8x128xf32> to vector<8xf32>
      %30 = vector.shape_cast %29 : vector<8xf32> to vector<8x1xf32>
      %31 = arith.addf %26, %30 : vector<8x1xf32>
      %c0_16 = arith.constant 0 : index
      %c0_17 = arith.constant 0 : index
      %32 = vector.load %arg9[%c0_16, %c0_17] : memref<8x1xf32, #tpu.memory_space<vmem>>, vector<8x1xf32>
      tpu.vector_store %arg9[%c0_16, %c0_17], %31 {strides = array<i32>} : memref<8x1xf32, #tpu.memory_space<vmem>>, vector<8x1xf32>,
      %c0_18 = arith.constant 0 : index
      %c0_19 = arith.constant 0 : index
      %33 = vector.load %arg7[%c0_18, %c0_19] : memref<8x1xf32, #tpu.memory_space<vmem>>, vector<8x1xf32>
      %cst_20 = arith.constant dense<0xFF800000> : vector<8xf32>
      %34 = vector.multi_reduction <maximumf>, %6, %cst_20 [1] : vector<8x128xf32> to vector<8xf32>
      %35 = vector.shape_cast %34 : vector<8xf32> to vector<8x1xf32>
      %36 = arith.maximumf %33, %35 : vector<8x1xf32>
      %c0_21 = arith.constant 0 : index
      %c0_22 = arith.constant 0 : index
      %37 = vector.load %arg7[%c0_21, %c0_22] : memref<8x1xf32, #tpu.memory_space<vmem>>, vector<8x1xf32>
      %38 = arith.subf %37, %36 : vector<8x1xf32>
      %39 = math.exp %38 : vector<8x1xf32>
      %40 = vector.broadcast %36 : vector<8x1xf32> to vector<8x128xf32>
      %41 = arith.subf %6, %40 : vector<8x128xf32>
      %42 = math.exp %41 : vector<8x128xf32>
      %c0_23 = arith.constant 0 : index
      %c0_24 = arith.constant 0 : index
      %43 = vector.load %arg8[%c0_23, %c0_24] : memref<8x1xf32, #tpu.memory_space<vmem>>, vector<8x1xf32>
      %44 = arith.mulf %39, %43 : vector<8x1xf32>
      %cst_25 = arith.constant dense<0.000000e+00> : vector<8xf32>
      %45 = vector.multi_reduction <add>, %42, %cst_25 [1] : vector<8x128xf32> to vector<8xf32>
      %46 = vector.shape_cast %45 : vector<8xf32> to vector<8x1xf32>
      %47 = arith.addf %44, %46 : vector<8x1xf32>
      %c0_26 = arith.constant 0 : index
      %c0_27 = arith.constant 0 : index
      %48 = vector.load %arg8[%c0_26, %c0_27] : memref<8x1xf32, #tpu.memory_space<vmem>>, vector<8x1xf32>
      tpu.vector_store %arg8[%c0_26, %c0_27], %47 {strides = array<i32>} : memref<8x1xf32, #tpu.memory_space<vmem>>, vector<8x1xf32>,
      %c0_28 = arith.constant 0 : index
      %c0_29 = arith.constant 0 : index
      %49 = vector.load %arg7[%c0_28, %c0_29] : memref<8x1xf32, #tpu.memory_space<vmem>>, vector<8x1xf32>
      tpu.vector_store %arg7[%c0_28, %c0_29], %36 {strides = array<i32>} : memref<8x1xf32, #tpu.memory_space<vmem>>, vector<8x1xf32>,
    } else {
    }
    %c0_i32_10 = arith.constant 0 : i32
    %20 = arith.cmpi eq, %arg1, %c0_i32_10 : i32
    %21 = arith.extui %20 : i1 to i32
    %c0_i32_11 = arith.constant 0 : i32
    %22 = arith.cmpi ne, %21, %c0_i32_11 : i32
    scf.if %22 {
      %c0_12 = arith.constant 0 : index
      %c0_13 = arith.constant 0 : index
      %23 = vector.load %arg7[%c0_12, %c0_13] : memref<8x1xf32, #tpu.memory_space<vmem>>, vector<8x1xf32>
      %c0_14 = arith.constant 0 : index
      %c0_15 = arith.constant 0 : index
      %24 = vector.load %arg8[%c0_14, %c0_15] : memref<8x1xf32, #tpu.memory_space<vmem>>, vector<8x1xf32>
      %25 = math.log %24 : vector<8x1xf32>
      %26 = arith.addf %23, %25 : vector<8x1xf32>
      %c0_16 = arith.constant 0 : index
      %c0_17 = arith.constant 0 : index
      %27 = vector.load %arg9[%c0_16, %c0_17] : memref<8x1xf32, #tpu.memory_space<vmem>>, vector<8x1xf32>
      %28 = arith.subf %26, %27 : vector<8x1xf32>
      %29 = tpu.iota {dimensions = array<i32: 0>} : vector<8x1xi32>
      %30 = vector.broadcast %0 : i32 to vector<8x1xi32>
      %31 = arith.addi %29, %30 : vector<8x1xi32>
      %c8_i32_18 = arith.constant 8 : i32
      %32 = vector.broadcast %c8_i32_18 : i32 to vector<8x1xi32>
      %33 = arith.cmpi slt, %31, %32 : vector<8x1xi32>
      %cst_19 = arith.constant 0.000000e+00 : f32
      %34 = vector.broadcast %cst_19 : f32 to vector<8x1xf32>
      %35 = arith.select %33, %28, %34 : vector<8x1xi1>, vector<8x1xf32>
      %36 = vector.shape_cast %35 : vector<8x1xf32> to vector<1x8x1xf32>
      %cst_20 = arith.constant dense<0.000000e+00> : vector<1xf32>
      %37 = vector.multi_reduction <add>, %36, %cst_20 [1, 2] : vector<1x8x1xf32> to vector<1xf32>
      %38 = vector.shape_cast %37 : vector<1xf32> to vector<1x1x1xf32>
      %39 = vector.extract %38[0, 0, 0] : f32 from vector<1x1x1xf32>
      %40 = tpu.iota {dimensions = array<i32: 0>} : vector<8x128xi32>
      %41 = tpu.iota {dimensions = array<i32: 1>} : vector<8x128xi32>
      %c0_i32_21 = arith.constant 0 : i32
      %42 = vector.broadcast %c0_i32_21 : i32 to vector<8x128xi32>
      %43 = arith.cmpi eq, %40, %42 : vector<8x128xi32>
      %c0_i32_22 = arith.constant 0 : i32
      %44 = vector.broadcast %c0_i32_22 : i32 to vector<8x128xi32>
      %45 = arith.cmpi eq, %41, %44 : vector<8x128xi32>
      %46 = arith.andi %43, %45 : vector<8x128xi1>
      %cst_23 = arith.constant 0.000000e+00 : f32
      %47 = vector.broadcast %39 : f32 to vector<8x128xf32>
      %48 = vector.broadcast %cst_23 : f32 to vector<8x128xf32>
      %49 = arith.select %46, %47, %48 : vector<8x128xi1>, vector<8x128xf32>
      %c0_24 = arith.constant 0 : index
      %c0_25 = arith.constant 0 : index
      %50 = vector.load %arg5[%c0_24, %c0_25] : memref<8x128xf32, #tpu.memory_space<vmem>>, vector<8x128xf32>
      tpu.vector_store %arg5[%c0_24, %c0_25], %49 {strides = array<i32>} : memref<8x128xf32, #tpu.memory_space<vmem>>, vector<8x128xf32>,
    } else {
    }
    return
  }
  func.func @transform_0(%arg0: i32, %arg1: i32) -> (i32, i32) {
    %c0_i32 = arith.constant 0 : i32
    %c0_i32_0 = arith.constant 0 : i32
    return %arg0, %c0_i32 : i32, i32
  }
  func.func @transform_1(%arg0: i32, %arg1: i32) -> (i32, i32) {
    %c0_i32 = arith.constant 0 : i32
    %c0_i32_0 = arith.constant 0 : i32
    return %arg1, %c0_i32 : i32, i32
  }
  func.func @transform_2(%arg0: i32, %arg1: i32) -> (i32, i32) {
    %c0_i32 = arith.constant 0 : i32
    %c0_i32_0 = arith.constant 0 : i32
    return %arg0, %c0_i32 : i32, i32
  }
  func.func @transform_3(%arg0: i32, %arg1: i32) -> (i32, i32) {
    %c0_i32 = arith.constant 0 : i32
    %c0_i32_0 = arith.constant 0 : i32
    return %arg0, %c0_i32 : i32, i32
  }
}

</mosaic_0001>

<bundles_post_ra>
// kernel: tpu_custom_call.1
= control target key start
LH: loop header
LB: loop body
LE: loop exit
PB: predicated region body
PF: predicated region fallthrough
CT: control target
= control target key end

     0   :  { %8 = vsyncpa [#allocation7], 0  ;;  %s481_s0 = inlined_call_operand.vmem [shape: f32[8,128], index: 0, kind: input, shape index: {}]   ;;  %s482_s1 = inlined_call_operand.hbm [shape: f32[128,128], index: 1, kind: input, shape index: {}]   ;;  %s483_s2 = inlined_call_operand.vmem [shape: s32[8,1], index: 2, kind: input, shape index: {}]   ;;  %s484_s3 = inlined_call_operand.hbm [shape: f32[8,128], index: 3, kind: output, shape index: {}]  }
   0x1   :  { %9 = vsyncpa [#allocation8], 0  ;;  %s415_s12 = smov [#allocation6]   ;;  %s367_s16 = scalar_lea.hbm %s482_s1, 2048 }
   0x2   :  { %s17_s13 = sshll.u32 %s415_s12, 4  ;;  %p368_p0 = scmp.ne.s32.totalorder %s482_s1, %s367_s16  ;;  %s18_s13 = int_to_ptr.vmem [resolvable:$true] %s17_s13 }
   0x3   :  { %p371_p1 = scmp.lt.u32.totalorder %s367_s16, %s482_s1 }
   0x5   :  { %p373_p2 = pnand %p371_p1, %p368_p0 }
   0x7   :  { %376 = shalt.err (!%p373_p2)
}
   0x8   :  { %s377_s21 = scalar_lea.vmem %s18_s13, 2048  ;;  %p382_p4 = scmp.lt.s32.totalorder %s18_s13, %s18_s13 }
   0x9   :  { %p378_p3 = scmp.ne.s32.totalorder %s18_s13, %s377_s21  ;;  %p383_p5 = scmp.lt.s32.totalorder %s377_s21, %s377_s21 }
   0xb   :  { %p384_p6 = por %p383_p5, %p382_p4 }
   0xd   :  { %p385_p7 = pnand %p384_p6, %p378_p3 }
   0xf   :  { %388 = shalt.err (!%p385_p7)
}
  0x10   :  { %s416_s22 = smov 128   ;;  %s417_s23 = smov 8  }
  0x11   :  { %23 = dma.hbm_to_vmem [thread:$0]  %s482_s1, 2048, %s18_s13, [#allocation7], %s416_s22, %s416_s22, %s417_s23  }
  0x12   :  { %411 = dma.done.wait [#allocation7], 2048  }
  0x13   :  { %412 = vsyncadd [#allocation7], 4294965248  ;;  %v418_v0 = vmov 0.0|0.0   ;;  %v34_v1 = vld [vmem:[%s481_s0] sm:$0xff]  ;;  %v48_v2 = vld [vmem:[#allocation6] sm:$0xff]  ;;  %vm43_vm0 = vcmask 7168   ;;  %v134_v34 = vlaneseq }
  0x14   :  { %322 = vmatprep.subr.bf16.mxu0 %v418_v0  ;;  %v49_v3 = vld [vmem:[#allocation6 + $0x8] sm:$0xff]  ;;  %v35_v4 = vmul.f32 %v34_v1, %v34_v1  ;;  %v50_v6 = vld [vmem:[#allocation6 + $0x10] sm:$0xff]  ;;  %v51_v7 = vld [vmem:[#allocation6 + $0x18] sm:$0xff]  ;;  %v419_v18 = vmov 0.0   ;;  %vm420_vm1 = vmmov 0   ;;  %v421_v33 = vmov -inf  }
  0x15   :  { %v323_v5 = vpack.c.bf16 %v49_v3, %v48_v2  ;;  %v326_v8 = vpack.c.bf16 %v51_v7, %v50_v6  ;;  %v52_v9 = vld [vmem:[#allocation6 + $0x20] sm:$0xff]  ;;  %v53_v10 = vld [vmem:[#allocation6 + $0x28] sm:$0xff]  ;;  %v54_v12 = vld [vmem:[#allocation6 + $0x30] sm:$0xff]  ;;  %45 = vst.msk [vmem:[#allocation4] sm:$0xff] %vm43_vm0, %v419_v18  ;;  %319 = vmatprep.mubr.msk.f32.mxu0 %vm420_vm1, %v419_v18  ;;  %v135_v35 = vand.u32 127, %v134_v34  ;;  %v422_v39 = vmov 0  }
  0x16   :  { %36 = vadd.xlane.f32.xlu0 %v35_v4  ;;  %v329_v11 = vpack.c.bf16 %v53_v10, %v52_v9  ;;  %v55_v13 = vld [vmem:[#allocation6 + $0x38] sm:$0xff]  ;;  %v56_v15 = vld [vmem:[#allocation6 + $0x40] sm:$0xff]  ;;  %v57_v16 = vld [vmem:[#allocation6 + $0x48] sm:$0xff]  ;;  %46 = vst.msk [vmem:[#allocation5] sm:$0xff] %vm43_vm0, %v419_v18  ;;  %357 = vset.pattern.permute.xlu1 %v422_v39 }
  0x17   :  { %324 = vmatpush3.bf16.xpose.msra.mxu0 %v323_v5  ;;  %v332_v14 = vpack.c.bf16 %v55_v13, %v54_v12  ;;  %v335_v17 = vpack.c.bf16 %v57_v16, %v56_v15  ;;  %v58_v19 = vld [vmem:[#allocation6 + $0x50] sm:$0xff]  ;;  %v59_v20 = vld [vmem:[#allocation6 + $0x58] sm:$0xff]  ;;  %v60_v22 = vld [vmem:[#allocation6 + $0x60] sm:$0xff]  ;;  %44 = vst.msk [vmem:[#allocation3] sm:$0xff] %vm43_vm0, %v421_v33  ;;  %vm148_vm2 = vcmp.lt.s32.totalorder %v135_v35, 8  ;;  %358 = vset.pattern.permute.xlu0 %v422_v39  ;;  %vm250_vm5 = vcmp.eq.s32.totalorder %v135_v35, 0 }
  0x18   :  { %325 = vmatprep.subr.bf16.mxu0 %v418_v0  ;;  %v338_v21 = vpack.c.bf16 %v59_v20, %v58_v19  ;;  %v61_v23 = vld [vmem:[#allocation6 + $0x68] sm:$0xff]  ;;  %v62_v25 = vld [vmem:[#allocation6 + $0x70] sm:$0xff]  ;;  %v63_v26 = vld [vmem:[#allocation6 + $0x78] sm:$0xff] }
  0x19   :  { %v341_v24 = vpack.c.bf16 %v61_v23, %v60_v22  ;;  %v344_v27 = vpack.c.bf16 %v63_v26, %v62_v25  ;;  %v136_v44 = vld [vmem:[%s483_s2] sm:$0xff]  ;;  %s423_s2 = smov [#allocation9]  }
  0x1a   :  { %s261_s28 = sshll.u32 %s423_s2, 4  ;;  %s262_s28 = int_to_ptr.vmem [resolvable:$true] %s261_s28 }
  0x1b   :  { %s389_s30 = scalar_lea.vmem %s262_s28, 128  ;;  %p394_p9 = scmp.lt.s32.totalorder %s262_s28, %s262_s28 }
  0x1c   :  { %v178_v56 = vld [vmem:[#allocation4] sm:$0xff]  ;;  %p390_p8 = scmp.ne.s32.totalorder %s262_s28, %s389_s30  ;;  %p395_p10 = scmp.lt.s32.totalorder %s389_s30, %s389_s30 }
  0x1d   :  { %v156_v52 = vld [vmem:[#allocation5] sm:$0xff] }
  0x1e   :  { %v163_v40 = vld [vmem:[#allocation3] sm:$0xff]  ;;  %p396_p11 = por %p395_p10, %p394_p9 }
  0x1f   :  { %327 = vmatpush3.bf16.xpose.msra.mxu0 %v326_v8 }
  0x20   :  { %328 = vmatprep.subr.bf16.mxu0 %v418_v0  ;;  %p397_p12 = pnand %p396_p11, %p390_p8 }
  0x27   :  { %330 = vmatpush3.bf16.xpose.msra.mxu0 %v329_v11  ;;  %v233_v11 = vshrl.u32 %v134_v34, 7 }
  0x28   :  { %331 = vmatprep.subr.bf16.mxu0 %v418_v0 }
  0x29   :  { %vm249_vm4 = vcmp.eq.s32.totalorder %v233_v11, 0 }
  0x2a   :  { %vm251_vm6 = vmand %vm249_vm4, %vm250_vm5 }
  0x2f   :  { %333 = vmatpush3.bf16.xpose.msra.mxu0 %v332_v14 }
  0x30   :  { %334 = vmatprep.subr.bf16.mxu0 %v418_v0 }
  0x37   :  { %336 = vmatpush3.bf16.xpose.msra.mxu0 %v335_v17 }
  0x38   :  { %337 = vmatprep.subr.bf16.mxu0 %v418_v0 }
  0x3f   :  { %339 = vmatpush3.bf16.xpose.msra.mxu0 %v338_v21 }
  0x40   :  { %340 = vmatprep.subr.bf16.mxu0 %v418_v0 }
  0x47   :  { %342 = vmatpush3.bf16.xpose.msra.mxu0 %v341_v24 }
  0x48   :  { %343 = vmatprep.subr.bf16.mxu0 %v418_v0 }
  0x4f   :  { %345 = vmatpush3.bf16.xpose.msra.mxu0 %v344_v27 }
  0xa3   :  { %v37_v28 = vpop.xlane.xlu0 %36 }
  0xa4   :  { %v38_v29 = vmax.f32 %v37_v28, 1e-24 }
  0xa6   :  { %359 = vrsqrt.f32 %v38_v29 }
  0xb0   :  { %v360_v30 = vpop.eup %359 }
  0xb1   :  { %v40_v31 = vmul.f32 10.0, %v360_v30 }
  0xb3   :  { %v41_v32 = vmul.f32 %v40_v31, %v34_v1 }
  0xb5   :  { %320 = vmatmul.mubr.f32.vlgmr.msra.gmra.mrb[0].mxu0 %v41_v32 }
 0x188   :  { %v130_v36 = vpop.f32.mrb[0].mxu0 }
 0x189   :  { %v151_v37 = vsel %vm148_vm2, %v130_v36, -inf  ;;  %v321_v38 = vpop.f32.mrb[1].mxu0 }
 0x18a   :  { %164 = vmax.xlane.f32.xlu0 %v151_v37 }
 0x217   :  { %v165_v41 = vpop.xlane.xlu0 %164 }
 0x218   :  { %v166_v42 = vmax.f32 %v163_v40, %v165_v41 }
 0x21a   :  { %v167_v43 = vsub.f32 %v163_v40, %v166_v42  ;;  %184 = vst.msk [vmem:[#allocation3] sm:$0xff] %vm43_vm0, %v166_v42  ;;  %172 = vperm.xlu1 %357, %v166_v42  }
 0x21c   :  { %v168_v51 = vmul.f32 1.442695, %v167_v43 }
 0x21e   :  { %153 = vperm.xlu1 %357, %v136_v44  }
 0x221   :  { %v225_v63 = vld [vmem:[#allocation3] sm:$0xff] }
 0x299   :  { %v173_v45 = vpop.permute.xlu1 %172 }
 0x29a   :  { %v175_v46 = vsub.f32 %v151_v37, %v173_v45 }
 0x29c   :  { %v176_v47 = vmul.f32 1.442695, %v175_v46 }
 0x29d   :  { %v154_v48 = vpop.permute.xlu1 %153 }
 0x29e   :  { %361 = vpow2.f32 %v176_v47  ;;  %vm155_vm3 = vcmp.eq.s32.totalorder %v135_v35, %v154_v48 }
 0x29f   :  { %v157_v49 = vsel %vm155_vm3, %v151_v37, 0.0  ;;  %363 = vpow2.f32 %v168_v51 }
 0x2a0   :  { %158 = vadd.xlane.f32.xlu1 %v157_v49 }
 0x2a8   :  { %v362_v50 = vpop.eup %361 }
 0x2a9   :  { %180 = vadd.xlane.f32.xlu0 %v362_v50  ;;  %v364_v55 = vpop.eup %363 }
 0x2aa   :  { %v179_v57 = vmul.f32 %v364_v55, %v178_v56 }
 0x32d   :  { %v159_v53 = vpop.xlane.xlu1 %158 }
 0x32e   :  { %v160_v54 = vadd.f32 %v159_v53, %v156_v52 }
 0x330   :  { %162 = vst.msk [vmem:[#allocation5] sm:$0xff] %vm43_vm0, %v160_v54 }
 0x336   :  { %v181_v58 = vpop.xlane.xlu0 %180 }
 0x337   :  { %v182_v59 = vadd.f32 %v181_v58, %v179_v57  ;;  %v230_v1 = vld [vmem:[#allocation5] sm:$0xff] }
 0x339   :  { %183 = vst.msk [vmem:[#allocation4] sm:$0xff] %vm43_vm0, %v182_v59 }
 0x340   :  { %v226_v60 = vld [vmem:[#allocation4] sm:$0xff] }
 0x341   :  { %365 = vlog2.f32 %v226_v60 }
 0x34b   :  { %v366_v61 = vpop.eup %365 }
 0x34c   :  { %v228_v62 = vmul.f32 0.6931472, %v366_v61 }
 0x34e   :  { %v229_v0 = vadd.f32 %v228_v62, %v225_v63 }
 0x350   :  { %v231_v2 = vsub.f32 %v229_v0, %v230_v1 }
 0x352   :  { %v239_v3 = vsel %vm43_vm0, %v231_v2, 0.0 }
 0x353   :  { %240 = vadd.xlane.f32.xlu0 %v239_v3 }
 0x3e0   :  { %v241_v4 = vpop.xlane.xlu0 %240 }
 0x3e1   :  { %v242_v5 = vrot.slane %v241_v4, 4 }
 0x3e3   :  { %v243_v6 = vadd.f32 %v242_v5, %v241_v4 }
 0x3e5   :  { %v244_v7 = vrot.slane %v243_v6, 2 }
 0x3e7   :  { %v245_v8 = vadd.f32 %v244_v7, %v243_v6 }
 0x3e9   :  { %v246_v9 = vrot.slane %v245_v8, 1 }
 0x3eb   :  { %v247_v10 = vadd.f32 %v246_v9, %v245_v8 }
 0x3ed   :  { %346 = vpush %v247_v10 }
 0x41e   :  { %s347_s29 = spop %346 }
 0x41f   :  { %v252_v12 = vstv %s347_s29 }
 0x420   :  { %v253_v13 = vsel %vm251_vm6, %v252_v12, 0.0 }
 0x421   :  { %254 = vst [vmem:[#allocation9] sm:$0xff] %v253_v13 }
 0x422   :  { %400 = shalt.err (!%p397_p12)
}
 0x423   :  { %s401_s6 = scalar_lea.hbm %s484_s3, 128 }
 0x424   :  { %p402_p13 = scmp.ne.s32.totalorder %s484_s3, %s401_s6  ;;  %p405_p0 = scmp.lt.u32.totalorder %s401_s6, %s484_s3 }
 0x426   :  { %p407_p1 = pnand %p405_p0, %p402_p13 }
 0x428   :  { %410 = shalt.err (!%p407_p1)
}
 0x429   :  { %264 = dma.vmem_to_hbm [thread:$0]  %s262_s28, 128, %s484_s3, [#allocation8]  }
 0x42a   :  { %413 = dma.done.wait [#allocation8], 128  }
 0x42b   :  { %414 = vsyncadd [#allocation8], 4294967168 }
 0x42c   :  { %268 = vsyncpa [#allocation7], 1 }
 0x42d   :  { %269 = vsyncpa [#allocation8], 1 }

</bundles_post_ra>
